<compile_context>
chip_gen: v5e
topology: v5e:2x2
jax: 0.10.0
libtpu: 0.0.40
codegen_flags: <defaults>
</compile_context>

<pallas_src>
import functools

import jax
import jax.numpy as jnp
from jax import lax
from jax.experimental import pallas as pl
from jax.experimental.pallas import tpu as pltpu


def _round_up(x: int, m: int) -> int:
    return ((x + m - 1) // m) * m


def _tree_sum(parts):
    """Pairwise (tree) sum of a static list of equally-shaped arrays."""
    while len(parts) > 1:
        nxt = [parts[i] + parts[i + 1] for i in range(0, len(parts) - 1, 2)]
        if len(parts) % 2:
            nxt.append(parts[-1])
        parts = nxt
    return parts[0]


def _consistency_kernel(ne_i_ref, p_i_ref, negent_i_ref,   # i-block inputs
                        ne_j_ref, logp_j_ref,               # j-block inputs
                        tot_ref, cnt_ref,                    # resident (1,8,128) outputs
                        *, threshold, batch, tile, pad):
    i_blk = pl.program_id(0)
    j_blk = pl.program_id(1)
    last_i = pl.num_programs(0) - 1
    last_j = pl.num_programs(1) - 1

    # Reset the per-i-block partial-sum accumulators (resident across the j axis).
    @pl.when(j_blk == 0)
    def _():
        tot_ref[...] = jnp.zeros_like(tot_ref)
        cnt_ref[...] = jnp.zeros_like(cnt_ref)

    # Contract the LAST dim of both operands -> "A @ B^T" without an XLU transpose.
    DN = (((1,), (1,)), ((), ()))

    # sim[a, b]   = <ne_i[a], ne_j[b]>                       (f32 operands by default)
    sim = lax.dot_general(ne_i_ref[...], ne_j_ref[...], dimension_numbers=DN,
                          preferred_element_type=jnp.float32)            # [TB, TB]
    # cross[a, b] = sum_k p_i[a, k] * logp_j[b, k]            (bf16 operands, f32 acc)
    cross = lax.dot_general(p_i_ref[...], logp_j_ref[...], dimension_numbers=DN,
                            preferred_element_type=jnp.float32)          # [TB, TB]
    # kl[a, b] = KL(p_i[a] || p_j[b]); the similarity mask is symmetric, so the
    # masked sum equals the reference's masked sum of KL(p_j || p_i).
    kl_tile = negent_i_ref[...] - cross                                  # [TB, TB]

    def _slab_reduce(x):
        # (TB, TB) f32 -> (8, 128) partial sum.  When TB % 128 == 0 this is a tree
        # of vreg-aligned static slices + VPU adds (no full XLU cross-lane reduce,
        # no scalar broadcast); the final cross-lane reduce happens in the wrapper.
        if tile % 128 == 0:
            strips = [x[:, c * 128:(c + 1) * 128] for c in range(tile // 128)]
            col = _tree_sum(strips)                                      # (TB, 128)
            rows = [col[g * 8:(g + 1) * 8, :] for g in range(tile // 8)]
            return _tree_sum(rows)                                       # (8, 128)
        # Small-tile fallback (TB < 128): scalar reduce into a one-hot slab.
        r0 = lax.broadcasted_iota(jnp.int32, (8, 128), 0) == 0
        c0 = lax.broadcasted_iota(jnp.int32, (8, 128), 1) == 0
        return jnp.where(r0 & c0, jnp.sum(x), 0.0)

    def _accumulate(m):
        tot_ref[...] += _slab_reduce(jnp.where(m, kl_tile, 0.0))[None]
        cnt_ref[...] += _slab_reduce(jnp.where(m, 1.0, 0.0))[None]

    # Only diagonal blocks (and padded-edge blocks) need iota-based exclusion.
    need_ids = i_blk == j_blk
    if pad:
        need_ids = jnp.logical_or(
            need_ids, jnp.logical_or(i_blk == last_i, j_blk == last_j))

    @pl.when(need_ids)
    def _():
        row = i_blk * tile + lax.broadcasted_iota(jnp.int32, (tile, tile), 0)
        col = j_blk * tile + lax.broadcasted_iota(jnp.int32, (tile, tile), 1)
        m = (sim > threshold) & (row != col)
        if pad:
            m = m & (row < batch) & (col < batch)
        _accumulate(m)

    @pl.when(jnp.logical_not(need_ids))
    def _():
        _accumulate(sim > threshold)


def consistency_loss(routing_probs, input_embeddings,
                     weight: float = 1.0, similarity_threshold: float = 0.8,
                     *, block_rows: int = 512,
                     sim_dtype=jnp.float32, kl_dtype=jnp.bfloat16,
                     vmem_limit_bytes=None):
    """Pallas implementation of ConsistencyLoss.forward. Returns a scalar f32."""
    B, E = routing_probs.shape
    _, H = input_embeddings.shape
    if B < 2:
        return jnp.asarray(0.0, dtype=jnp.float32)

    # ---- hoisted per-row precompute (once, in XLA) instead of per grid step ----
    emb = input_embeddings.astype(jnp.float32)
    # F.normalize(emb, p=2, eps=1e-12): rsqrt of squared norm, clamped at 1e-24.
    ne = emb * lax.rsqrt(jnp.maximum(
        jnp.sum(emb * emb, axis=-1, keepdims=True), 1e-24))
    logp = jax.nn.log_softmax(routing_probs.astype(jnp.float32), axis=-1)
    p = jnp.exp(logp)
    negent = jnp.sum(p * logp, axis=-1, keepdims=True)        # [B, 1] f32
    # sim operands stay f32 by default so `sim > threshold` decisions match the
    # reference exactly; KL matmul operands go to bf16 (native MXU, half the DMA).
    ne = ne.astype(sim_dtype)
    p_kl = p.astype(kl_dtype)
    logp_kl = logp.astype(kl_dtype)

    # Row-block size: multiple of 8 (sublanes); 512 default is lane-aligned and
    # fits the re-derived v7x 64 MiB/TC VMEM budget with bf16 KL operands.
    TB = min(_round_up(int(block_rows), 8), _round_up(B, 8))
    B_pad = _round_up(B, TB)
    pad = B_pad - B
    if pad:
        ne = jnp.pad(ne, ((0, pad), (0, 0)))
        p_kl = jnp.pad(p_kl, ((0, pad), (0, 0)))
        logp_kl = jnp.pad(logp_kl, ((0, pad), (0, 0)))
        negent = jnp.pad(negent, ((0, pad), (0, 0)))
    n_blk = B_pad // TB
    # TODO(synk): for v7x megacore prefer a TB that makes n_blk even, and a
    # triangular (j >= i) grid via PrefetchScalarGridSpec would halve steps/DMA
    # by exploiting mask symmetry; left for a follow-up structural change.

    ne_b = jnp.dtype(sim_dtype).itemsize
    kl_b = jnp.dtype(kl_dtype).itemsize
    est = (2 * 2 * TB * H * ne_b          # ne i/j blocks, double-buffered
           + 2 * 2 * TB * E * kl_b        # p_i / logp_j blocks, double-buffered
           + 2 * 2 * TB * 4               # negent i-block
           + 8 * TB * TB * 4              # sim/cross/kl/mask/iota temporaries
           + 4 * 2 * 8 * 128 * 4)         # resident output accumulator tiles
    if vmem_limit_bytes is None and est > 16 * 1024 * 1024:
        # v7x has 64 MiB VMEM per TensorCore; cap well below to leave headroom
        # for compiler-internal scratch (also fine on v5e/v6e's 128 MiB).
        vmem_limit_bytes = min(int(est * 1.25), 48 * 1024 * 1024)

    kernel = functools.partial(
        _consistency_kernel,
        threshold=float(similarity_threshold),
        batch=int(B), tile=int(TB), pad=bool(pad))

    totals, counts = pl.pallas_call(
        kernel,
        grid=(n_blk, n_blk),
        in_specs=[
            pl.BlockSpec((TB, H), lambda i, j: (i, 0)),   # normalized emb, i-block
            pl.BlockSpec((TB, E), lambda i, j: (i, 0)),   # softmax p,      i-block
            pl.BlockSpec((TB, 1), lambda i, j: (i, 0)),   # neg-entropy,    i-block
            pl.BlockSpec((TB, H), lambda i, j: (j, 0)),   # normalized emb, j-block
            pl.BlockSpec((TB, E), lambda i, j: (j, 0)),   # log_softmax,    j-block
        ],
        out_shape=(
            jax.ShapeDtypeStruct((n_blk, 8, 128), jnp.float32),  # partial totals
            jax.ShapeDtypeStruct((n_blk, 8, 128), jnp.float32),  # partial counts
        ),
        out_specs=(
            pl.BlockSpec((1, 8, 128), lambda i, j: (i, 0, 0)),
            pl.BlockSpec((1, 8, 128), lambda i, j: (i, 0, 0)),
        ),
        compiler_params=pltpu.CompilerParams(
            dimension_semantics=("parallel", "arbitrary"),
            vmem_limit_bytes=vmem_limit_bytes),
    )(ne, p_kl, negent, ne, logp_kl)

    total = jnp.sum(totals)
    count = jnp.sum(counts)
    # TODO(synk): weight/threshold are static Python floats (recompile per value);
    # pass them as SMEM scalars if they need to vary at runtime.
    loss = jnp.where(count > 0.0,
                     weight * total / jnp.maximum(count, 1.0),
                     jnp.float32(0.0))
    return loss.astype(jnp.float32)


def _reference(routing_probs, input_embeddings, weight=1.0, threshold=0.8,
               kl_dtype=jnp.float32):
    """Pure-JAX reference mirroring the PyTorch forward semantics."""
    B = routing_probs.shape[0]
    r = routing_probs.astype(jnp.float32)
    e = input_embeddings.astype(jnp.float32)
    ne = e / jnp.maximum(jnp.linalg.norm(e, axis=-1, keepdims=True), 1e-12)
    sim = ne @ ne.T
    mask = (sim > threshold) & ~jnp.eye(B, dtype=bool)
    logp = jax.nn.log_softmax(r, axis=-1)
    p = jnp.exp(logp)
    negent = jnp.sum(p * logp, axis=-1)
    cross = jnp.einsum('ik,jk->ij', p.astype(kl_dtype), logp.astype(kl_dtype),
                       preferred_element_type=jnp.float32)
    kl = negent[:, None] - cross          # kl[i, j] = KL(p_i || p_j); mask symmetric
    maskf = mask.astype(jnp.float32)
    cnt = jnp.sum(maskf)
    return jnp.where(cnt > 0,
                     weight * jnp.sum(maskf * kl) / jnp.maximum(cnt, 1.0), 0.0)


if __name__ == "__main__":
    key = jax.random.PRNGKey(0)
    k1, k2, k3, k4, k5, k6, k7 = jax.random.split(key, 7)

    # --- Test 1: module-implied small shapes (single tile, fallback reduce path) ---
    B, E, H = 8, 8, 32
    rp = jax.random.normal(k1, (B, E), dtype=jnp.float32)
    emb = jax.random.normal(k2, (B, H), dtype=jnp.float32)
    # Make a few rows nearly identical so some pairs exceed the threshold.
    emb = emb.at[1].set(emb[0] + 0.01 * jax.random.normal(k3, (H,), dtype=jnp.float32))
    emb = emb.at[5].set(emb[4])

    out_f32 = jax.block_until_ready(
        consistency_loss(rp, emb, 1.0, 0.8, kl_dtype=jnp.float32))
    ref_f32 = _reference(rp, emb, 1.0, 0.8)
    assert jnp.allclose(out_f32, ref_f32, rtol=1e-5, atol=1e-6), (out_f32, ref_f32)

    out_bf16 = jax.block_until_ready(consistency_loss(rp, emb, 1.0, 0.8))
    ref_bf16 = _reference(rp, emb, 1.0, 0.8, kl_dtype=jnp.bfloat16)
    assert jnp.allclose(out_bf16, ref_bf16, rtol=1e-3, atol=1e-4), (out_bf16, ref_bf16)
    assert jnp.allclose(out_bf16, ref_f32, rtol=0.1, atol=0.1), (out_bf16, ref_f32)

    # --- Test 2: multi-block grid with batch padding (diag / edge mask paths) ---
    B2, E2, H2 = 40, 16, 64
    r2 = jax.random.normal(k4, (B2, E2), dtype=jnp.float32)
    e2 = jax.random.normal(k5, (B2, H2), dtype=jnp.float32)
    e2 = e2.at[7].set(e2[3])      # similar pair inside block 0
    e2 = e2.at[25].set(e2[3])     # cross-block similar pair
    e2 = e2.at[39].set(e2[12])    # pair touching the padded edge block
    out2 = jax.block_until_ready(
        consistency_loss(r2, e2, weight=0.7, similarity_threshold=0.8,
                         block_rows=16, kl_dtype=jnp.float32))
    ref2 = _reference(r2, e2, 0.7, 0.8)
    assert jnp.allclose(out2, ref2, rtol=1e-5, atol=1e-6), (out2, ref2)

    # --- Test 3: multi-block grid on the lane-aligned (TB % 128 == 0) VPU-reduce path ---
    B3, E3, H3 = 256, 16, 64
    r3 = jax.random.normal(k6, (B3, E3), dtype=jnp.float32)
    e3 = jax.random.normal(k7, (B3, H3), dtype=jnp.float32)
    e3 = e3.at[17].set(e3[3])     # similar pair inside block 0
    e3 = e3.at[130].set(e3[5])    # cross-block similar pair
    e3 = e3.at[200].set(e3[10])   # another cross-block similar pair
    out3_f32 = jax.block_until_ready(
        consistency_loss(r3, e3, weight=1.3, similarity_threshold=0.8,
                         block_rows=128, kl_dtype=jnp.float32))
    ref3 = _reference(r3, e3, 1.3, 0.8)
    assert jnp.allclose(out3_f32, ref3, rtol=1e-4, atol=1e-5), (out3_f32, ref3)
    out3_bf16 = jax.block_until_ready(
        consistency_loss(r3, e3, weight=1.3, similarity_threshold=0.8,
                         block_rows=128))
    ref3_bf16 = _reference(r3, e3, 1.3, 0.8, kl_dtype=jnp.bfloat16)
    assert jnp.allclose(out3_bf16, ref3_bf16, rtol=1e-3, atol=1e-4), (out3_bf16, ref3_bf16)

    print("KERNEL_OK")
</pallas_src>

<mosaic_0001>
module attributes {stable_mosaic.version = 11 : i64} {
  func.func @_consistency_kernel(%arg0: i32, %arg1: i32, %arg2: memref<8x32xf32, #tpu.memory_space<vmem>>, %arg3: memref<8x8xf32, #tpu.memory_space<vmem>>, %arg4: memref<8x1xf32, #tpu.memory_space<vmem>>, %arg5: memref<8x32xf32, #tpu.memory_space<vmem>>, %arg6: memref<8x8xf32, #tpu.memory_space<vmem>>, %arg7: memref<1x8x128xf32, #tpu.memory_space<vmem>>, %arg8: memref<1x8x128xf32, #tpu.memory_space<vmem>>) attributes {dimension_semantics = [#tpu.dimension_semantics<parallel>, #tpu.dimension_semantics<arbitrary>], iteration_bounds = array<i64: 1, 1>, scalar_prefetch = 0 : i64, scratch_operands = 0 : i64, tpu.core_type = #tpu.core_type<tc>, window_params = [{transform_indices = @transform_0, window_bounds = array<i64: 8, 32>}, {transform_indices = @transform_1, window_bounds = array<i64: 8, 8>}, {transform_indices = @transform_2, window_bounds = array<i64: 8, 1>}, {transform_indices = @transform_3, window_bounds = array<i64: 8, 32>}, {transform_indices = @transform_4, window_bounds = array<i64: 8, 8>}, {transform_indices = @transform_5, window_bounds = array<i64: 1, 8, 128>}, {transform_indices = @transform_6, window_bounds = array<i64: 1, 8, 128>}]} {
    %c0_i32 = arith.constant 0 : i32
    %0 = arith.cmpi eq, %arg1, %c0_i32 : i32
    %1 = arith.extui %0 : i1 to i32
    %c0_i32_0 = arith.constant 0 : i32
    %2 = arith.cmpi ne, %1, %c0_i32_0 : i32
    scf.if %2 {
      %cst_13 = arith.constant 0.000000e+00 : f32
      %18 = vector.broadcast %cst_13 : f32 to vector<1x8x128xf32>
      %c0_14 = arith.constant 0 : index
      %c0_15 = arith.constant 0 : index
      %c0_16 = arith.constant 0 : index
      %19 = vector.load %arg7[%c0_14, %c0_15, %c0_16] : memref<1x8x128xf32, #tpu.memory_space<vmem>>, vector<1x8x128xf32>
      tpu.vector_store %arg7[%c0_14, %c0_15, %c0_16], %18 {strides = array<i32>} : memref<1x8x128xf32, #tpu.memory_space<vmem>>, vector<1x8x128xf32>,
      %cst_17 = arith.constant 0.000000e+00 : f32
      %20 = vector.broadcast %cst_17 : f32 to vector<1x8x128xf32>
      %c0_18 = arith.constant 0 : index
      %c0_19 = arith.constant 0 : index
      %c0_20 = arith.constant 0 : index
      %21 = vector.load %arg8[%c0_18, %c0_19, %c0_20] : memref<1x8x128xf32, #tpu.memory_space<vmem>>, vector<1x8x128xf32>
      tpu.vector_store %arg8[%c0_18, %c0_19, %c0_20], %20 {strides = array<i32>} : memref<1x8x128xf32, #tpu.memory_space<vmem>>, vector<1x8x128xf32>,
    } else {
    }
    %c0 = arith.constant 0 : index
    %c0_1 = arith.constant 0 : index
    %3 = vector.load %arg2[%c0, %c0_1] : memref<8x32xf32, #tpu.memory_space<vmem>>, vector<8x32xf32>
    %c0_2 = arith.constant 0 : index
    %c0_3 = arith.constant 0 : index
    %4 = vector.load %arg5[%c0_2, %c0_3] : memref<8x32xf32, #tpu.memory_space<vmem>>, vector<8x32xf32>
    %cst = arith.constant dense<0.000000e+00> : vector<8x8xf32>
    %5 = tpu.matmul %3, %4, %cst {dimension_numbers = #tpu.dot_dimension_numbers<[1], [1], [0], [0], [0, 0, 1, 0], [], []>} : vector<8x32xf32>, vector<8x32xf32>, vector<8x8xf32> -> vector<8x8xf32>
    %c0_4 = arith.constant 0 : index
    %c0_5 = arith.constant 0 : index
    %6 = vector.load %arg3[%c0_4, %c0_5] : memref<8x8xf32, #tpu.memory_space<vmem>>, vector<8x8xf32>
    %c0_6 = arith.constant 0 : index
    %c0_7 = arith.constant 0 : index
    %7 = vector.load %arg6[%c0_6, %c0_7] : memref<8x8xf32, #tpu.memory_space<vmem>>, vector<8x8xf32>
    %cst_8 = arith.constant dense<0.000000e+00> : vector<8x8xf32>
    %8 = tpu.matmul %6, %7, %cst_8 {dimension_numbers = #tpu.dot_dimension_numbers<[1], [1], [0], [0], [0, 0, 1, 0], [], []>} : vector<8x8xf32>, vector<8x8xf32>, vector<8x8xf32> -> vector<8x8xf32>
    %c0_9 = arith.constant 0 : index
    %c0_10 = arith.constant 0 : index
    %9 = vector.load %arg4[%c0_9, %c0_10] : memref<8x1xf32, #tpu.memory_space<vmem>>, vector<8x1xf32>
    %10 = vector.broadcast %9 : vector<8x1xf32> to vector<8x8xf32>
    %11 = arith.subf %10, %8 : vector<8x8xf32>
    %12 = arith.cmpi eq, %arg0, %arg1 : i32
    %13 = arith.extui %12 : i1 to i32
    %c0_i32_11 = arith.constant 0 : i32
    %14 = arith.cmpi ne, %13, %c0_i32_11 : i32
    scf.if %14 {
      %c8_i32 = arith.constant 8 : i32
      %18 = arith.muli %arg0, %c8_i32 : i32
      %19 = tpu.iota {dimensions = array<i32: 0>} : vector<8x8xi32>
      %20 = vector.broadcast %18 : i32 to vector<8x8xi32>
      %21 = arith.addi %20, %19 : vector<8x8xi32>
      %c8_i32_13 = arith.constant 8 : i32
      %22 = arith.muli %arg1, %c8_i32_13 : i32
      %23 = tpu.iota {dimensions = array<i32: 1>} : vector<8x8xi32>
      %24 = vector.broadcast %22 : i32 to vector<8x8xi32>
      %25 = arith.addi %24, %23 : vector<8x8xi32>
      %cst_14 = arith.constant 8.000000e-01 : f32
      %26 = vector.broadcast %cst_14 : f32 to vector<8x8xf32>
      %27 = arith.cmpf ogt, %5, %26 : vector<8x8xf32>
      %28 = arith.cmpi ne, %21, %25 : vector<8x8xi32>
      %29 = arith.andi %27, %28 : vector<8x8xi1>
      %c0_15 = arith.constant 0 : index
      %c0_16 = arith.constant 0 : index
      %c0_17 = arith.constant 0 : index
      %30 = vector.load %arg7[%c0_15, %c0_16, %c0_17] : memref<1x8x128xf32, #tpu.memory_space<vmem>>, vector<1x8x128xf32>
      %cst_18 = arith.constant 0.000000e+00 : f32
      %31 = vector.broadcast %cst_18 : f32 to vector<8x8xf32>
      %32 = arith.select %29, %11, %31 : vector<8x8xi1>, vector<8x8xf32>
      %33 = tpu.iota {dimensions = array<i32: 0>} : vector<8x128xi32>
      %c0_i32_19 = arith.constant 0 : i32
      %34 = vector.broadcast %c0_i32_19 : i32 to vector<8x128xi32>
      %35 = arith.cmpi eq, %33, %34 : vector<8x128xi32>
      %36 = tpu.iota {dimensions = array<i32: 1>} : vector<8x128xi32>
      %c0_i32_20 = arith.constant 0 : i32
      %37 = vector.broadcast %c0_i32_20 : i32 to vector<8x128xi32>
      %38 = arith.cmpi eq, %36, %37 : vector<8x128xi32>
      %39 = arith.andi %35, %38 : vector<8x128xi1>
      %40 = vector.shape_cast %32 : vector<8x8xf32> to vector<1x8x8xf32>
      %cst_21 = arith.constant dense<0.000000e+00> : vector<1xf32>
      %41 = vector.multi_reduction <add>, %40, %cst_21 [1, 2] : vector<1x8x8xf32> to vector<1xf32>
      %42 = vector.shape_cast %41 : vector<1xf32> to vector<1x1x1xf32>
      %43 = vector.extract %42[0, 0, 0] : f32 from vector<1x1x1xf32>
      %cst_22 = arith.constant 0.000000e+00 : f32
      %44 = vector.broadcast %43 : f32 to vector<8x128xf32>
      %45 = vector.broadcast %cst_22 : f32 to vector<8x128xf32>
      %46 = arith.select %39, %44, %45 : vector<8x128xi1>, vector<8x128xf32>
      %47 = vector.shape_cast %46 : vector<8x128xf32> to vector<1x8x128xf32>
      %48 = arith.addf %30, %47 : vector<1x8x128xf32>
      %c0_23 = arith.constant 0 : index
      %c0_24 = arith.constant 0 : index
      %c0_25 = arith.constant 0 : index
      %49 = vector.load %arg7[%c0_23, %c0_24, %c0_25] : memref<1x8x128xf32, #tpu.memory_space<vmem>>, vector<1x8x128xf32>
      tpu.vector_store %arg7[%c0_23, %c0_24, %c0_25], %48 {strides = array<i32>} : memref<1x8x128xf32, #tpu.memory_space<vmem>>, vector<1x8x128xf32>,
      %c0_26 = arith.constant 0 : index
      %c0_27 = arith.constant 0 : index
      %c0_28 = arith.constant 0 : index
      %50 = vector.load %arg8[%c0_26, %c0_27, %c0_28] : memref<1x8x128xf32, #tpu.memory_space<vmem>>, vector<1x8x128xf32>
      %cst_29 = arith.constant 1.000000e+00 : f32
      %cst_30 = arith.constant 0.000000e+00 : f32
      %51 = vector.broadcast %cst_29 : f32 to vector<8x8xf32>
      %52 = vector.broadcast %cst_30 : f32 to vector<8x8xf32>
      %53 = arith.select %29, %51, %52 : vector<8x8xi1>, vector<8x8xf32>
      %54 = tpu.iota {dimensions = array<i32: 0>} : vector<8x128xi32>
      %c0_i32_31 = arith.constant 0 : i32
      %55 = vector.broadcast %c0_i32_31 : i32 to vector<8x128xi32>
      %56 = arith.cmpi eq, %54, %55 : vector<8x128xi32>
      %57 = tpu.iota {dimensions = array<i32: 1>} : vector<8x128xi32>
      %c0_i32_32 = arith.constant 0 : i32
      %58 = vector.broadcast %c0_i32_32 : i32 to vector<8x128xi32>
      %59 = arith.cmpi eq, %57, %58 : vector<8x128xi32>
      %60 = arith.andi %56, %59 : vector<8x128xi1>
      %61 = vector.shape_cast %53 : vector<8x8xf32> to vector<1x8x8xf32>
      %cst_33 = arith.constant dense<0.000000e+00> : vector<1xf32>
      %62 = vector.multi_reduction <add>, %61, %cst_33 [1, 2] : vector<1x8x8xf32> to vector<1xf32>
      %63 = vector.shape_cast %62 : vector<1xf32> to vector<1x1x1xf32>
      %64 = vector.extract %63[0, 0, 0] : f32 from vector<1x1x1xf32>
      %cst_34 = arith.constant 0.000000e+00 : f32
      %65 = vector.broadcast %64 : f32 to vector<8x128xf32>
      %66 = vector.broadcast %cst_34 : f32 to vector<8x128xf32>
      %67 = arith.select %60, %65, %66 : vector<8x128xi1>, vector<8x128xf32>
      %68 = vector.shape_cast %67 : vector<8x128xf32> to vector<1x8x128xf32>
      %69 = arith.addf %50, %68 : vector<1x8x128xf32>
      %c0_35 = arith.constant 0 : index
      %c0_36 = arith.constant 0 : index
      %c0_37 = arith.constant 0 : index
      %70 = vector.load %arg8[%c0_35, %c0_36, %c0_37] : memref<1x8x128xf32, #tpu.memory_space<vmem>>, vector<1x8x128xf32>
      tpu.vector_store %arg8[%c0_35, %c0_36, %c0_37], %69 {strides = array<i32>} : memref<1x8x128xf32, #tpu.memory_space<vmem>>, vector<1x8x128xf32>,
    } else {
    }
    %true = arith.constant true
    %15 = arith.xori %12, %true : i1
    %16 = arith.extui %15 : i1 to i32
    %c0_i32_12 = arith.constant 0 : i32
    %17 = arith.cmpi ne, %16, %c0_i32_12 : i32
    scf.if %17 {
      %cst_13 = arith.constant 8.000000e-01 : f32
      %18 = vector.broadcast %cst_13 : f32 to vector<8x8xf32>
      %19 = arith.cmpf ogt, %5, %18 : vector<8x8xf32>
      %c0_14 = arith.constant 0 : index
      %c0_15 = arith.constant 0 : index
      %c0_16 = arith.constant 0 : index
      %20 = vector.load %arg7[%c0_14, %c0_15, %c0_16] : memref<1x8x128xf32, #tpu.memory_space<vmem>>, vector<1x8x128xf32>
      %cst_17 = arith.constant 0.000000e+00 : f32
      %21 = vector.broadcast %cst_17 : f32 to vector<8x8xf32>
      %22 = arith.select %19, %11, %21 : vector<8x8xi1>, vector<8x8xf32>
      %23 = tpu.iota {dimensions = array<i32: 0>} : vector<8x128xi32>
      %c0_i32_18 = arith.constant 0 : i32
      %24 = vector.broadcast %c0_i32_18 : i32 to vector<8x128xi32>
      %25 = arith.cmpi eq, %23, %24 : vector<8x128xi32>
      %26 = tpu.iota {dimensions = array<i32: 1>} : vector<8x128xi32>
      %c0_i32_19 = arith.constant 0 : i32
      %27 = vector.broadcast %c0_i32_19 : i32 to vector<8x128xi32>
      %28 = arith.cmpi eq, %26, %27 : vector<8x128xi32>
      %29 = arith.andi %25, %28 : vector<8x128xi1>
      %30 = vector.shape_cast %22 : vector<8x8xf32> to vector<1x8x8xf32>
      %cst_20 = arith.constant dense<0.000000e+00> : vector<1xf32>
      %31 = vector.multi_reduction <add>, %30, %cst_20 [1, 2] : vector<1x8x8xf32> to vector<1xf32>
      %32 = vector.shape_cast %31 : vector<1xf32> to vector<1x1x1xf32>
      %33 = vector.extract %32[0, 0, 0] : f32 from vector<1x1x1xf32>
      %cst_21 = arith.constant 0.000000e+00 : f32
      %34 = vector.broadcast %33 : f32 to vector<8x128xf32>
      %35 = vector.broadcast %cst_21 : f32 to vector<8x128xf32>
      %36 = arith.select %29, %34, %35 : vector<8x128xi1>, vector<8x128xf32>
      %37 = vector.shape_cast %36 : vector<8x128xf32> to vector<1x8x128xf32>
      %38 = arith.addf %20, %37 : vector<1x8x128xf32>
      %c0_22 = arith.constant 0 : index
      %c0_23 = arith.constant 0 : index
      %c0_24 = arith.constant 0 : index
      %39 = vector.load %arg7[%c0_22, %c0_23, %c0_24] : memref<1x8x128xf32, #tpu.memory_space<vmem>>, vector<1x8x128xf32>
      tpu.vector_store %arg7[%c0_22, %c0_23, %c0_24], %38 {strides = array<i32>} : memref<1x8x128xf32, #tpu.memory_space<vmem>>, vector<1x8x128xf32>,
      %c0_25 = arith.constant 0 : index
      %c0_26 = arith.constant 0 : index
      %c0_27 = arith.constant 0 : index
      %40 = vector.load %arg8[%c0_25, %c0_26, %c0_27] : memref<1x8x128xf32, #tpu.memory_space<vmem>>, vector<1x8x128xf32>
      %cst_28 = arith.constant 1.000000e+00 : f32
      %cst_29 = arith.constant 0.000000e+00 : f32
      %41 = vector.broadcast %cst_28 : f32 to vector<8x8xf32>
      %42 = vector.broadcast %cst_29 : f32 to vector<8x8xf32>
      %43 = arith.select %19, %41, %42 : vector<8x8xi1>, vector<8x8xf32>
      %44 = tpu.iota {dimensions = array<i32: 0>} : vector<8x128xi32>
      %c0_i32_30 = arith.constant 0 : i32
      %45 = vector.broadcast %c0_i32_30 : i32 to vector<8x128xi32>
      %46 = arith.cmpi eq, %44, %45 : vector<8x128xi32>
      %47 = tpu.iota {dimensions = array<i32: 1>} : vector<8x128xi32>
      %c0_i32_31 = arith.constant 0 : i32
      %48 = vector.broadcast %c0_i32_31 : i32 to vector<8x128xi32>
      %49 = arith.cmpi eq, %47, %48 : vector<8x128xi32>
      %50 = arith.andi %46, %49 : vector<8x128xi1>
      %51 = vector.shape_cast %43 : vector<8x8xf32> to vector<1x8x8xf32>
      %cst_32 = arith.constant dense<0.000000e+00> : vector<1xf32>
      %52 = vector.multi_reduction <add>, %51, %cst_32 [1, 2] : vector<1x8x8xf32> to vector<1xf32>
      %53 = vector.shape_cast %52 : vector<1xf32> to vector<1x1x1xf32>
      %54 = vector.extract %53[0, 0, 0] : f32 from vector<1x1x1xf32>
      %cst_33 = arith.constant 0.000000e+00 : f32
      %55 = vector.broadcast %54 : f32 to vector<8x128xf32>
      %56 = vector.broadcast %cst_33 : f32 to vector<8x128xf32>
      %57 = arith.select %50, %55, %56 : vector<8x128xi1>, vector<8x128xf32>
      %58 = vector.shape_cast %57 : vector<8x128xf32> to vector<1x8x128xf32>
      %59 = arith.addf %40, %58 : vector<1x8x128xf32>
      %c0_34 = arith.constant 0 : index
      %c0_35 = arith.constant 0 : index
      %c0_36 = arith.constant 0 : index
      %60 = vector.load %arg8[%c0_34, %c0_35, %c0_36] : memref<1x8x128xf32, #tpu.memory_space<vmem>>, vector<1x8x128xf32>
      tpu.vector_store %arg8[%c0_34, %c0_35, %c0_36], %59 {strides = array<i32>} : memref<1x8x128xf32, #tpu.memory_space<vmem>>, vector<1x8x128xf32>,
    } else {
    }
    return
  }
  func.func @transform_0(%arg0: i32, %arg1: i32) -> (i32, i32) {
    %c0_i32 = arith.constant 0 : i32
    %c0_i32_0 = arith.constant 0 : i32
    return %arg0, %c0_i32 : i32, i32
  }
  func.func @transform_1(%arg0: i32, %arg1: i32) -> (i32, i32) {
    %c0_i32 = arith.constant 0 : i32
    %c0_i32_0 = arith.constant 0 : i32
    return %arg0, %c0_i32 : i32, i32
  }
  func.func @transform_2(%arg0: i32, %arg1: i32) -> (i32, i32) {
    %c0_i32 = arith.constant 0 : i32
    %c0_i32_0 = arith.constant 0 : i32
    return %arg0, %c0_i32 : i32, i32
  }
  func.func @transform_3(%arg0: i32, %arg1: i32) -> (i32, i32) {
    %c0_i32 = arith.constant 0 : i32
    %c0_i32_0 = arith.constant 0 : i32
    return %arg1, %c0_i32 : i32, i32
  }
  func.func @transform_4(%arg0: i32, %arg1: i32) -> (i32, i32) {
    %c0_i32 = arith.constant 0 : i32
    %c0_i32_0 = arith.constant 0 : i32
    return %arg1, %c0_i32 : i32, i32
  }
  func.func @transform_5(%arg0: i32, %arg1: i32) -> (i32, i32, i32) {
    %c0_i32 = arith.constant 0 : i32
    %c0_i32_0 = arith.constant 0 : i32
    %c0_i32_1 = arith.constant 0 : i32
    return %arg0, %c0_i32, %c0_i32_0 : i32, i32, i32
  }
  func.func @transform_6(%arg0: i32, %arg1: i32) -> (i32, i32, i32) {
    %c0_i32 = arith.constant 0 : i32
    %c0_i32_0 = arith.constant 0 : i32
    %c0_i32_1 = arith.constant 0 : i32
    return %arg0, %c0_i32, %c0_i32_0 : i32, i32, i32
  }
}

</mosaic_0001>

<bundles_post_ra>
// kernel: tpu_custom_call.1
= control target key start
LH: loop header
LB: loop body
LE: loop exit
PB: predicated region body
PF: predicated region fallthrough
CT: control target
= control target key end

     0   :  { %12 = vsyncpa [#allocation3], 0  ;;  %s477_s0 = inlined_call_operand.vmem [shape: f32[8,32], index: 0, kind: input, shape index: {}]   ;;  %s478_s1 = inlined_call_operand.hbm [shape: f32[8,8], index: 1, kind: input, shape index: {}]   ;;  %s479_s2 = inlined_call_operand.vmem [shape: f32[8,1], index: 2, kind: input, shape index: {}]   ;;  %s480_s3 = inlined_call_operand.hbm [shape: f32[8,32], index: 3, kind: input, shape index: {}]   ;;  %s481_s4 = inlined_call_operand.hbm [shape: f32[8,8], index: 4, kind: input, shape index: {}]   ;;  %s482_s5 = inlined_call_operand.hbm [shape: f32[1,8,128], index: 5, kind: output, shape index: {0}]   ;;  %s483_s6 = inlined_call_operand.hbm [shape: f32[1,8,128], index: 6, kind: output, shape index: {1}]  }
   0x1   :  { %13 = vsyncpa [#allocation6], 0 }
   0x2   :  { %14 = vsyncpa [#allocation4], 0  ;;  %s36_s23 = sshll.u32 %s480_s3, 4  ;;  %s37_s23 = int_to_ptr.hbm [resolvable:$true] %s36_s23 }
   0x3   :  { %15 = vsyncpa [#allocation10], 0  ;;  %s410_s24 = smov [#allocation5]   ;;  %s23_s28 = sshll.u32 %s478_s1, 4  ;;  %s24_s28 = int_to_ptr.hbm [resolvable:$true] %s23_s28 }
   0x4   :  { %s38_s25 = sshll.u32 %s410_s24, 4  ;;  %s411_s29 = smov [#allocation2]   ;;  %s39_s25 = int_to_ptr.vmem [resolvable:$true] %s38_s25 }
   0x5   :  { %41 = dma.hbm_to_vmem [thread:$0]  %s37_s23, 128, %s39_s25, [#allocation6]  }
   0x6   :  { %s25_s30 = sshll.u32 %s411_s29, 4  ;;  %s47_s9 = sshll.u32 %s481_s4, 4  ;;  %s26_s30 = int_to_ptr.vmem [resolvable:$true] %s25_s30  ;;  %s48_s9 = int_to_ptr.hbm [resolvable:$true] %s47_s9 }
   0x7   :  { %28 = dma.hbm_to_vmem [thread:$0]  %s24_s28, 128, %s26_s30, [#allocation3]  }
   0x8   :  { %s412_s3 = smov [#allocation7]  }
   0x9   :  { %s49_s10 = sshll.u32 %s412_s3, 4  ;;  %s50_s10 = int_to_ptr.vmem [resolvable:$true] %s49_s10 }
   0xa   :  { %52 = dma.hbm_to_vmem [thread:$0]  %s48_s9, 128, %s50_s10, [#allocation6]  }
   0xb   :  { %402 = dma.done.wait [#allocation3], 128  }
   0xc   :  { %403 = vsyncadd [#allocation3], 4294967168 }
   0xd   :  { %404 = dma.done.wait [#allocation6], 256  }
   0xe   :  { %405 = vsyncadd [#allocation6], 4294967040  ;;  %v413_v0 = vmov 0   ;;  %vm73_vm0 = vcmask 261120   ;;  %vm102_vm1 = vcmask 64512   ;;  %v72_v1 = vld [vmem:[#allocation5] sm:$0xff]  ;;  %v141_v6 = vlaneseq }
   0xf   :  { %281 = vset.pattern.permute.xlu0 %v413_v0  ;;  %v101_v2 = vld [vmem:[#allocation7] sm:$0xff]  ;;  %266 = vmatpush.xpose.msk.msra.mxu0 %vm73_vm0, %v72_v1  ;;  %v71_v3 = vld [vmem:[%s477_s0] sm:$0xff]  ;;  %v414_v13 = vmov 0.0   ;;  %s415_s0 = smov [#allocation8]   ;;  %s239_s15 = sshll.u32 %s482_s5, 4  ;;  %s240_s15 = int_to_ptr.hbm [resolvable:$true] %s239_s15 }
  0x10   :  { %268 = vmatpush.xpose.msk.msra.mxu1 %vm102_vm1, %v101_v2  ;;  %v100_v4 = vld [vmem:[#allocation2] sm:$0xff]  ;;  %v142_v7 = vshrl.u32 %v141_v6, 7  ;;  %v147_v8 = vand.u32 127, %v141_v6  ;;  %s416_s17 = smov [#allocation9]   ;;  %s250_s22 = sshll.u32 %s483_s6, 4  ;;  %s251_s22 = int_to_ptr.hbm [resolvable:$true] %s250_s22 }
  0x11   :  { %v129_v5 = vld [vmem:[%s479_s2] sm:$0xff]  ;;  %s237_s2 = sshll.u32 %s415_s0, 4  ;;  %s248_s18 = sshll.u32 %s416_s17, 4  ;;  %s238_s2 = int_to_ptr.vmem [resolvable:$true] %s237_s2  ;;  %s249_s18 = int_to_ptr.vmem [resolvable:$true] %s248_s18 }
  0x12   :  { %132 = vperm.xlu0 %281, %v129_v5   ;;  %267 = vmatmul.msk.f32.vlgmr.msra.gmra.mxu0 %vm73_vm0, %v71_v3  ;;  %vm151_vm2 = vcmp.ne.s32.totalorder %v142_v7, %v147_v8  ;;  %vm155_vm5 = vcmp.eq.s32.totalorder %v142_v7, 0  ;;  %vm156_vm6 = vcmp.eq.s32.totalorder %v147_v8, 0 }
  0x13   :  { %269 = vmatmul.msk.f32.vlgmr.msra.gmra.mxu1 %vm102_vm1, %v100_v4  ;;  %vm157_vm7 = vmand %vm155_vm5, %vm156_vm6 }
  0x84   :  { %v133_v9 = vpop.permute.xlu0 %132 }
  0x8f   :  { %v97_v10 = vpop.f32.mrf.mxu0 }
  0x90   :  { %v126_v11 = vpop.f32.mrf.mxu1  ;;  %vm150_vm3 = vcmp.gt.f32.partialorder %v97_v10, 0.8 }
  0x91   :  { %v135_v12 = vsub.f32 %v133_v9, %v126_v11  ;;  %vm152_vm4 = vmand %vm150_vm3, %vm151_vm2 }
  0x92   :  { %v173_v14 = vsel %vm152_vm4, 1.0, %v414_v13 }
  0x93   :  { %v154_v15 = vsel %vm152_vm4, %v135_v12, 0.0  ;;  %v174_v16 = vsel %vm102_vm1, %v173_v14, 0.0 }
  0x94   :  { %v158_v17 = vsel %vm102_vm1, %v154_v15, 0.0  ;;  %175 = vadd.xlane.f32.xlu1 %v174_v16 }
  0x95   :  { %159 = vadd.xlane.f32.xlu0 %v158_v17 }
 0x107   :  { %v176_v18 = vpop.xlane.xlu1 %175 }
 0x108   :  { %v160_v19 = vpop.xlane.xlu0 %159  ;;  %v177_v20 = vrot.slane %v176_v18, 4 }
 0x109   :  { %v161_v21 = vrot.slane %v160_v19, 4 }
 0x10a   :  { %v178_v22 = vadd.f32 %v177_v20, %v176_v18 }
 0x10b   :  { %v162_v23 = vadd.f32 %v161_v21, %v160_v19 }
 0x10c   :  { %v179_v24 = vrot.slane %v178_v22, 2 }
 0x10d   :  { %v163_v25 = vrot.slane %v162_v23, 2 }
 0x10e   :  { %v180_v26 = vadd.f32 %v179_v24, %v178_v22 }
 0x10f   :  { %v164_v27 = vadd.f32 %v163_v25, %v162_v23 }
 0x110   :  { %v181_v29 = vrot.slane %v180_v26, 1 }
 0x111   :  { %v165_v28 = vrot.slane %v164_v27, 1 }
 0x112   :  { %v182_v31 = vadd.f32 %v181_v29, %v180_v26 }
 0x113   :  { %v166_v30 = vadd.f32 %v165_v28, %v164_v27 }
 0x115   :  { %270 = vpush %v166_v30 }
 0x116   :  { %272 = vpush %v182_v31 }
 0x146   :  { %s271_s16 = spop %270 }
 0x147   :  { %v168_v32 = vstv %s271_s16  ;;  %s273_s19 = spop %272 }
 0x148   :  { %v169_v33 = vsel %vm157_vm7, %v168_v32, 0.0  ;;  %v184_v34 = vstv %s273_s19 }
 0x149   :  { %v185_v35 = vsel %vm157_vm7, %v184_v34, 0.0  ;;  %171 = vst [vmem:[#allocation8] sm:$0xff] %v169_v33 }
 0x14a   :  { %187 = vst [vmem:[#allocation9] sm:$0xff] %v185_v35  ;;  %242 = dma.vmem_to_hbm [thread:$0]  %s238_s2, 128, %s240_s15, [#allocation4]  }
 0x14b   :  { %253 = dma.vmem_to_hbm [thread:$0]  %s249_s18, 128, %s251_s22, [#allocation10]  }
 0x14c   :  { %406 = dma.done.wait [#allocation4], 128  }
 0x14d   :  { %407 = vsyncadd [#allocation4], 4294967168 }
 0x14e   :  { %408 = dma.done.wait [#allocation10], 128  }
 0x14f   :  { %409 = vsyncadd [#allocation10], 4294967168 }
 0x150   :  { %262 = vsyncpa [#allocation3], 1 }
 0x151   :  { %263 = vsyncpa [#allocation6], 1 }
 0x152   :  { %264 = vsyncpa [#allocation4], 1 }
 0x153   :  { %265 = vsyncpa [#allocation10], 1 }

</bundles_post_ra>
